<compile_context>
chip_gen: v7x
topology: tpu7x:2x2x1
jax: 0.10.0
libtpu: 0.0.40
codegen_flags: <defaults>
</compile_context>

<pallas_src>
import functools

import jax
import jax.numpy as jnp
from jax import lax
from jax.experimental import pallas as pl
from jax.experimental.pallas import tpu as pltpu

_NORM_EPS_SQ = 1e-24  # (F.normalize eps = 1e-12)^2, clamp on the squared norm.


def _round_up(x: int, m: int) -> int:
    return (x + m - 1) // m * m


def _vmem_bytes(tm: int, tn: int, d_pad: int, itemsize: int) -> int:
    return (2 * tm * d_pad * itemsize      # anchor tiles (double-buffered)
            + 2 * tn * d_pad * itemsize    # candidate tiles (double-buffered)
            + tm * d_pad * itemsize        # inv_temp-scaled anchor scratch
            + 2 * tm * 4                   # running max / running sum scratch
            + 2 * tm * 4                   # output tile (double-buffered)
            + 3 * tm * tn * 4)             # logits / exp intermediates (f32)


def _pick_tiles(batch: int, d_pad: int, block_rows: int, block_cols: int,
                itemsize: int, budget: int):
    """Pick (TM, TN) with TN | TM, multiples of 16, fitting a VMEM budget."""
    tm = max(16, _round_up(min(block_rows, _round_up(batch, 16)), 16))
    while True:
        tn = max(16, _round_up(min(block_cols, tm), 16))
        if tm % tn:
            tn = tm  # keep TN | TM so row padding aligns with whole column blocks
        est = _vmem_bytes(tm, tn, d_pad, itemsize)
        if est <= budget or tm == 16:
            return tm, tn, est
        tm = max(16, _round_up(tm // 2, 16))


def _ntxent_lse_kernel(anchor_ref, cand_ref, lse_ref, a_scaled_ref, m_ref, l_ref, *,
                       inv_temp, num_valid, block_rows, block_cols, num_col_steps,
                       needs_row_mask, matmul_dtype):
    # All program_id reads at the TOP level (never inside pl.when closures).
    j = pl.program_id(2)
    row_off = pl.program_id(1) * block_rows
    last_col = num_col_steps - 1
    valid_last_cols = num_valid - last_col * block_cols   # static, >= 1 by construction
    needs_col_mask = valid_last_cols < block_cols         # static python bool

    @pl.when(j == 0)
    def _():
        # Fold 1/temperature into the pre-normalized anchor tile once per row block;
        # the scaled copy stays resident in VMEM for the whole column sweep.
        a = anchor_ref[...].astype(jnp.float32) * inv_temp
        a_scaled_ref[...] = a.astype(matmul_dtype)
        m_ref[...] = jnp.full_like(m_ref, -jnp.inf)
        l_ref[...] = jnp.zeros_like(l_ref)

    # (TM, TN) temperature-scaled cosine-similarity tile: contract last dims of both
    # operands (NT matmul, no transpose materialized), f32 accumulation on the MXU.
    logits = lax.dot_general(a_scaled_ref[...], cand_ref[...],
                             (((1,), (1,)), ((), ())),
                             preferred_element_type=jnp.float32)

    def lse_update(x):
        m_prev = m_ref[...]
        m_new = jnp.maximum(m_prev, jnp.max(x, axis=-1, keepdims=True))
        l_ref[...] = (l_ref[...] * jnp.exp(m_prev - m_new) +
                      jnp.sum(jnp.exp(x - m_new), axis=-1, keepdims=True))
        m_ref[...] = m_new

    if needs_col_mask:
        # Only the last column block contains padded candidates: pay the masking
        # cost there only. (-inf is safe: that block always has >= 1 valid column.)
        @pl.when(j != last_col)
        def _():
            lse_update(logits)

        @pl.when(j == last_col)
        def _():
            col = lax.broadcasted_iota(jnp.int32, (1, block_cols), 1)
            lse_update(jnp.where(col < valid_last_cols, logits, -jnp.inf))
    else:
        lse_update(logits)

    @pl.when(j == last_col)
    def _():
        lse = m_ref[...] + jnp.log(l_ref[...])
        if needs_row_mask:
            row = row_off + lax.broadcasted_iota(jnp.int32, (block_rows, 1), 0)
            lse = jnp.where(row < num_valid, lse, 0.0)
        lse_ref[...] = lse


def ntxent_loss(image_embeddings, text_embeddings, temperature: float = 0.5, *,
                block_rows: int = 1024, block_cols: int = 256,
                matmul_dtype=jnp.bfloat16,
                vmem_budget_bytes: int = 32 * 1024 * 1024):
    """Symmetric NT-Xent loss on (B, D) image/text embedding pairs."""
    assert image_embeddings.shape == text_embeddings.shape
    B, D = image_embeddings.shape
    inv_t = 1.0 / float(temperature)
    itemsize = jnp.dtype(matmul_dtype).itemsize

    d_pad = _round_up(D, 128)
    tm, tn, est = _pick_tiles(B, d_pad, block_rows, block_cols, itemsize,
                              vmem_budget_bytes)
    b_pad = _round_up(B, tm)
    num_row_blocks = b_pad // tm
    num_col_steps = pl.cdiv(B, tn)   # fully-padded column blocks never enter the grid

    # ---- O(B*D) wrapper-side work: L2-normalize (F.normalize semantics), quantize
    # once to the MXU dtype, and compute the positives (direction-symmetric diag).
    def normalize(x):
        x = x.astype(jnp.float32)
        return x * lax.rsqrt(jnp.maximum(jnp.sum(x * x, -1, keepdims=True),
                                         _NORM_EPS_SQ))

    emb_q = jnp.stack([normalize(image_embeddings),
                       normalize(text_embeddings)]).astype(matmul_dtype)   # (2, B, D)
    q = emb_q.astype(jnp.float32)
    pos = jnp.sum(q[0] * q[1], axis=-1) * inv_t                            # (B,)

    # Single shared (2, b_pad, d_pad) array in HBM; both anchors and candidates
    # are sliced out of it via BlockSpec index maps (no duplicate stacks).
    emb = jnp.pad(emb_q, ((0, 0), (0, b_pad - B), (0, d_pad - D)))

    kernel = functools.partial(
        _ntxent_lse_kernel,
        inv_temp=inv_t,
        num_valid=B,
        block_rows=tm,
        block_cols=tn,
        num_col_steps=num_col_steps,
        needs_row_mask=(b_pad != B),
        matmul_dtype=matmul_dtype,
    )

    vmem_limit = int(min(max(est * 5 // 4 + (4 << 20), 16 << 20), 100 << 20))

    lse = pl.pallas_call(
        kernel,
        out_shape=jax.ShapeDtypeStruct((2, b_pad, 1), jnp.float32),
        grid_spec=pltpu.PrefetchScalarGridSpec(
            num_scalar_prefetch=0,
            grid=(2, num_row_blocks, num_col_steps),
            in_specs=[
                # anchors of direction d: resident across the column sweep.
                pl.BlockSpec((None, tm, d_pad), lambda d, i, j: (d, i, 0)),
                # candidates = embeddings of the OTHER modality, streamed over j.
                pl.BlockSpec((None, tn, d_pad), lambda d, i, j: (1 - d, j, 0)),
            ],
            out_specs=pl.BlockSpec((None, tm, 1), lambda d, i, j: (d, i, 0)),
            scratch_shapes=[
                pltpu.VMEM((tm, d_pad), matmul_dtype),   # inv_temp-scaled anchors
                pltpu.VMEM((tm, 1), jnp.float32),        # running max
                pltpu.VMEM((tm, 1), jnp.float32),        # running sum(exp)
            ],
        ),
        compiler_params=pltpu.CompilerParams(
            dimension_semantics=("parallel", "parallel", "arbitrary"),
            vmem_limit_bytes=vmem_limit,
        ),
    )(emb, emb)

    # 0.5 * (mean_rows(lse0 - pos) + mean_rows(lse1 - pos)); padded rows are 0.
    return (jnp.sum(lse) - 2.0 * jnp.sum(pos)) / (2.0 * B)


def _reference_loss(image_embeddings, text_embeddings, temperature: float = 0.5,
                    quantize_like_kernel: bool = False):
    """Pure-JAX reference of the same math (sanity check)."""
    inv_t = 1.0 / temperature

    def normalize(x):
        x = x.astype(jnp.float32)
        n = x * lax.rsqrt(jnp.maximum(jnp.sum(x * x, -1, keepdims=True),
                                      _NORM_EPS_SQ))
        if quantize_like_kernel:
            n = n.astype(jnp.bfloat16).astype(jnp.float32)
        return n

    img_n = normalize(image_embeddings)
    txt_n = normalize(text_embeddings)

    def one_direction(a_n, c_n):
        a_s = a_n * inv_t
        if quantize_like_kernel:
            a_s = a_s.astype(jnp.bfloat16).astype(jnp.float32)
        logits = a_s @ c_n.T
        lse = jax.nn.logsumexp(logits, axis=-1)
        pos = jnp.sum(a_n * c_n, axis=-1) * inv_t
        return jnp.mean(lse - pos)

    return 0.5 * (one_direction(img_n, txt_n) + one_direction(txt_n, img_n))


if __name__ == "__main__":
    # Module params: temperature=0.5, learn_temperature=False (plain scalar).
    temperature = 0.5
    key = jax.random.PRNGKey(0)
    k1, k2, k3, k4, k5, k6 = jax.random.split(key, 6)

    # Case 1: tiny aligned batch (B=8, D=32) -- single-tile path.
    B, D = 8, 32
    image_embeddings = jax.random.normal(k1, (B, D), dtype=jnp.float32)
    text_embeddings = jax.random.normal(k2, (B, D), dtype=jnp.float32)
    loss = jax.block_until_ready(
        ntxent_loss(image_embeddings, text_embeddings, temperature))
    ref_q = _reference_loss(image_embeddings, text_embeddings, temperature,
                            quantize_like_kernel=True)
    ref_f = _reference_loss(image_embeddings, text_embeddings, temperature)
    assert jnp.allclose(loss, ref_q, atol=1e-4, rtol=1e-4), (loss, ref_q)
    assert jnp.allclose(loss, ref_f, atol=5e-2, rtol=5e-2), (loss, ref_f)

    # Case 2: ragged B/D with decoupled TM != TN -- exercises multiple row blocks,
    # the online logsumexp across several column blocks, the last-block column mask
    # and the padded-row mask.
    B2, D2 = 40, 72
    img2 = jax.random.normal(k3, (B2, D2), dtype=jnp.float32)
    txt2 = jax.random.normal(k4, (B2, D2), dtype=jnp.float32)
    loss2 = jax.block_until_ready(
        ntxent_loss(img2, txt2, temperature, block_rows=32, block_cols=16))
    ref2_q = _reference_loss(img2, txt2, temperature, quantize_like_kernel=True)
    assert jnp.allclose(loss2, ref2_q, atol=1e-4, rtol=1e-4), (loss2, ref2_q)

    # Case 3: ragged shapes with a single column step (mask on j == 0 == last).
    B3, D3 = 13, 40
    img3 = jax.random.normal(k5, (B3, D3), dtype=jnp.float32)
    txt3 = jax.random.normal(k6, (B3, D3), dtype=jnp.float32)
    loss3 = jax.block_until_ready(ntxent_loss(img3, txt3, temperature))
    ref3_q = _reference_loss(img3, txt3, temperature, quantize_like_kernel=True)
    assert jnp.allclose(loss3, ref3_q, atol=1e-4, rtol=1e-4), (loss3, ref3_q)

    print("KERNEL_OK")
</pallas_src>

<mosaic_0001>
module attributes {stable_mosaic.version = 11 : i64} {
  func.func @_ntxent_lse_kernel(%arg0: i32, %arg1: i32, %arg2: i32, %arg3: memref<1x16x128xbf16, #tpu.memory_space<vmem>>, %arg4: memref<1x16x128xbf16, #tpu.memory_space<vmem>>, %arg5: memref<1x16x1xf32, #tpu.memory_space<vmem>>, %arg6: memref<16x128xbf16, #tpu.memory_space<vmem>>, %arg7: memref<16x1xf32, #tpu.memory_space<vmem>>, %arg8: memref<16x1xf32, #tpu.memory_space<vmem>>) attributes {dimension_semantics = [#tpu.dimension_semantics<parallel>, #tpu.dimension_semantics<parallel>, #tpu.dimension_semantics<arbitrary>], iteration_bounds = array<i64: 2, 1, 1>, scalar_prefetch = 0 : i64, scratch_operands = 3 : i64, tpu.core_type = #tpu.core_type<tc>, window_params = [{transform_indices = @transform_0, window_bounds = array<i64: 1, 16, 128>}, {transform_indices = @transform_1, window_bounds = array<i64: 1, 16, 128>}, {transform_indices = @transform_2, window_bounds = array<i64: 1, 16, 1>}]} {
    %c16_i32 = arith.constant 16 : i32
    %0 = arith.muli %arg1, %c16_i32 : i32
    %c0_i32 = arith.constant 0 : i32
    %1 = arith.cmpi eq, %arg2, %c0_i32 : i32
    %2 = arith.extui %1 : i1 to i32
    %c0_i32_0 = arith.constant 0 : i32
    %3 = arith.cmpi ne, %2, %c0_i32_0 : i32
    scf.if %3 {
      %c0_11 = arith.constant 0 : index
      %c0_12 = arith.constant 0 : index
      %c0_13 = arith.constant 0 : index
      %17 = vector.load %arg3[%c0_11, %c0_12, %c0_13] : memref<1x16x128xbf16, #tpu.memory_space<vmem>>, vector<1x16x128xbf16>
      %18 = vector.shape_cast %17 : vector<1x16x128xbf16> to vector<16x128xbf16>
      %19 = arith.extf %18 : vector<16x128xbf16> to vector<16x128xf32>
      %cst_14 = arith.constant 2.000000e+00 : f32
      %20 = vector.broadcast %cst_14 : f32 to vector<16x128xf32>
      %21 = arith.mulf %19, %20 : vector<16x128xf32>
      %22 = arith.truncf %21 : vector<16x128xf32> to vector<16x128xbf16>
      %c0_15 = arith.constant 0 : index
      %c0_16 = arith.constant 0 : index
      %23 = vector.load %arg6[%c0_15, %c0_16] : memref<16x128xbf16, #tpu.memory_space<vmem>>, vector<16x128xbf16>
      tpu.vector_store %arg6[%c0_15, %c0_16], %22 {strides = array<i32>} : memref<16x128xbf16, #tpu.memory_space<vmem>>, vector<16x128xbf16>,
      %cst_17 = arith.constant 0xFF800000 : f32
      %24 = vector.broadcast %cst_17 : f32 to vector<16x1xf32>
      %c0_18 = arith.constant 0 : index
      %c0_19 = arith.constant 0 : index
      %25 = vector.load %arg7[%c0_18, %c0_19] : memref<16x1xf32, #tpu.memory_space<vmem>>, vector<16x1xf32>
      tpu.vector_store %arg7[%c0_18, %c0_19], %24 {strides = array<i32>} : memref<16x1xf32, #tpu.memory_space<vmem>>, vector<16x1xf32>,
      %cst_20 = arith.constant 0.000000e+00 : f32
      %26 = vector.broadcast %cst_20 : f32 to vector<16x1xf32>
      %c0_21 = arith.constant 0 : index
      %c0_22 = arith.constant 0 : index
      %27 = vector.load %arg8[%c0_21, %c0_22] : memref<16x1xf32, #tpu.memory_space<vmem>>, vector<16x1xf32>
      tpu.vector_store %arg8[%c0_21, %c0_22], %26 {strides = array<i32>} : memref<16x1xf32, #tpu.memory_space<vmem>>, vector<16x1xf32>,
    } else {
    }
    %c0 = arith.constant 0 : index
    %c0_1 = arith.constant 0 : index
    %4 = vector.load %arg6[%c0, %c0_1] : memref<16x128xbf16, #tpu.memory_space<vmem>>, vector<16x128xbf16>
    %c0_2 = arith.constant 0 : index
    %c0_3 = arith.constant 0 : index
    %c0_4 = arith.constant 0 : index
    %5 = vector.load %arg4[%c0_2, %c0_3, %c0_4] : memref<1x16x128xbf16, #tpu.memory_space<vmem>>, vector<1x16x128xbf16>
    %6 = vector.shape_cast %5 : vector<1x16x128xbf16> to vector<16x128xbf16>
    %cst = arith.constant dense<0.000000e+00> : vector<16x16xf32>
    %7 = tpu.matmul %4, %6, %cst {dimension_numbers = #tpu.dot_dimension_numbers<[1], [1], [0], [0], [0, 0, 1, 0], [], []>} : vector<16x128xbf16>, vector<16x128xbf16>, vector<16x16xf32> -> vector<16x16xf32>
    %c0_i32_5 = arith.constant 0 : i32
    %8 = arith.cmpi ne, %arg2, %c0_i32_5 : i32
    %9 = arith.extui %8 : i1 to i32
    %c0_i32_6 = arith.constant 0 : i32
    %10 = arith.cmpi ne, %9, %c0_i32_6 : i32
    scf.if %10 {
      %c0_11 = arith.constant 0 : index
      %c0_12 = arith.constant 0 : index
      %17 = vector.load %arg7[%c0_11, %c0_12] : memref<16x1xf32, #tpu.memory_space<vmem>>, vector<16x1xf32>
      %cst_13 = arith.constant dense<0xFF800000> : vector<16xf32>
      %18 = vector.multi_reduction <maximumf>, %7, %cst_13 [1] : vector<16x16xf32> to vector<16xf32>
      %19 = vector.shape_cast %18 : vector<16xf32> to vector<16x1xf32>
      %20 = arith.maximumf %17, %19 : vector<16x1xf32>
      %c0_14 = arith.constant 0 : index
      %c0_15 = arith.constant 0 : index
      %21 = vector.load %arg8[%c0_14, %c0_15] : memref<16x1xf32, #tpu.memory_space<vmem>>, vector<16x1xf32>
      %22 = arith.subf %17, %20 : vector<16x1xf32>
      %23 = math.exp %22 : vector<16x1xf32>
      %24 = arith.mulf %21, %23 : vector<16x1xf32>
      %25 = vector.broadcast %20 : vector<16x1xf32> to vector<16x16xf32>
      %26 = arith.subf %7, %25 : vector<16x16xf32>
      %27 = math.exp %26 : vector<16x16xf32>
      %cst_16 = arith.constant dense<0.000000e+00> : vector<16xf32>
      %28 = vector.multi_reduction <add>, %27, %cst_16 [1] : vector<16x16xf32> to vector<16xf32>
      %29 = vector.shape_cast %28 : vector<16xf32> to vector<16x1xf32>
      %30 = arith.addf %24, %29 : vector<16x1xf32>
      %c0_17 = arith.constant 0 : index
      %c0_18 = arith.constant 0 : index
      %31 = vector.load %arg8[%c0_17, %c0_18] : memref<16x1xf32, #tpu.memory_space<vmem>>, vector<16x1xf32>
      tpu.vector_store %arg8[%c0_17, %c0_18], %30 {strides = array<i32>} : memref<16x1xf32, #tpu.memory_space<vmem>>, vector<16x1xf32>,
      %c0_19 = arith.constant 0 : index
      %c0_20 = arith.constant 0 : index
      %32 = vector.load %arg7[%c0_19, %c0_20] : memref<16x1xf32, #tpu.memory_space<vmem>>, vector<16x1xf32>
      tpu.vector_store %arg7[%c0_19, %c0_20], %20 {strides = array<i32>} : memref<16x1xf32, #tpu.memory_space<vmem>>, vector<16x1xf32>,
    } else {
    }
    %c0_i32_7 = arith.constant 0 : i32
    %11 = arith.cmpi eq, %arg2, %c0_i32_7 : i32
    %12 = arith.extui %11 : i1 to i32
    %c0_i32_8 = arith.constant 0 : i32
    %13 = arith.cmpi ne, %12, %c0_i32_8 : i32
    scf.if %13 {
      %17 = tpu.iota {dimensions = array<i32: 1>} : vector<1x16xi32>
      %c8_i32 = arith.constant 8 : i32
      %18 = vector.broadcast %c8_i32 : i32 to vector<1x16xi32>
      %19 = arith.cmpi slt, %17, %18 : vector<1x16xi32>
      %cst_11 = arith.constant 0xFF800000 : f32
      %20 = vector.shape_cast %19 : vector<1x16xi1> to vector<1x16xi1>
      %21 = vector.broadcast %20 : vector<1x16xi1> to vector<16x16xi1>
      %22 = vector.broadcast %cst_11 : f32 to vector<16x16xf32>
      %23 = arith.select %21, %7, %22 : vector<16x16xi1>, vector<16x16xf32>
      %c0_12 = arith.constant 0 : index
      %c0_13 = arith.constant 0 : index
      %24 = vector.load %arg7[%c0_12, %c0_13] : memref<16x1xf32, #tpu.memory_space<vmem>>, vector<16x1xf32>
      %cst_14 = arith.constant dense<0xFF800000> : vector<16xf32>
      %25 = vector.multi_reduction <maximumf>, %23, %cst_14 [1] : vector<16x16xf32> to vector<16xf32>
      %26 = vector.shape_cast %25 : vector<16xf32> to vector<16x1xf32>
      %27 = arith.maximumf %24, %26 : vector<16x1xf32>
      %c0_15 = arith.constant 0 : index
      %c0_16 = arith.constant 0 : index
      %28 = vector.load %arg8[%c0_15, %c0_16] : memref<16x1xf32, #tpu.memory_space<vmem>>, vector<16x1xf32>
      %29 = arith.subf %24, %27 : vector<16x1xf32>
      %30 = math.exp %29 : vector<16x1xf32>
      %31 = arith.mulf %28, %30 : vector<16x1xf32>
      %32 = vector.broadcast %27 : vector<16x1xf32> to vector<16x16xf32>
      %33 = arith.subf %23, %32 : vector<16x16xf32>
      %34 = math.exp %33 : vector<16x16xf32>
      %cst_17 = arith.constant dense<0.000000e+00> : vector<16xf32>
      %35 = vector.multi_reduction <add>, %34, %cst_17 [1] : vector<16x16xf32> to vector<16xf32>
      %36 = vector.shape_cast %35 : vector<16xf32> to vector<16x1xf32>
      %37 = arith.addf %31, %36 : vector<16x1xf32>
      %c0_18 = arith.constant 0 : index
      %c0_19 = arith.constant 0 : index
      %38 = vector.load %arg8[%c0_18, %c0_19] : memref<16x1xf32, #tpu.memory_space<vmem>>, vector<16x1xf32>
      tpu.vector_store %arg8[%c0_18, %c0_19], %37 {strides = array<i32>} : memref<16x1xf32, #tpu.memory_space<vmem>>, vector<16x1xf32>,
      %c0_20 = arith.constant 0 : index
      %c0_21 = arith.constant 0 : index
      %39 = vector.load %arg7[%c0_20, %c0_21] : memref<16x1xf32, #tpu.memory_space<vmem>>, vector<16x1xf32>
      tpu.vector_store %arg7[%c0_20, %c0_21], %27 {strides = array<i32>} : memref<16x1xf32, #tpu.memory_space<vmem>>, vector<16x1xf32>,
    } else {
    }
    %c0_i32_9 = arith.constant 0 : i32
    %14 = arith.cmpi eq, %arg2, %c0_i32_9 : i32
    %15 = arith.extui %14 : i1 to i32
    %c0_i32_10 = arith.constant 0 : i32
    %16 = arith.cmpi ne, %15, %c0_i32_10 : i32
    scf.if %16 {
      %c0_11 = arith.constant 0 : index
      %c0_12 = arith.constant 0 : index
      %17 = vector.load %arg7[%c0_11, %c0_12] : memref<16x1xf32, #tpu.memory_space<vmem>>, vector<16x1xf32>
      %c0_13 = arith.constant 0 : index
      %c0_14 = arith.constant 0 : index
      %18 = vector.load %arg8[%c0_13, %c0_14] : memref<16x1xf32, #tpu.memory_space<vmem>>, vector<16x1xf32>
      %19 = math.log %18 : vector<16x1xf32>
      %20 = arith.addf %17, %19 : vector<16x1xf32>
      %21 = tpu.iota {dimensions = array<i32: 0>} : vector<16x1xi32>
      %22 = vector.broadcast %0 : i32 to vector<16x1xi32>
      %23 = arith.addi %22, %21 : vector<16x1xi32>
      %c8_i32 = arith.constant 8 : i32
      %24 = vector.broadcast %c8_i32 : i32 to vector<16x1xi32>
      %25 = arith.cmpi slt, %23, %24 : vector<16x1xi32>
      %cst_15 = arith.constant 0.000000e+00 : f32
      %26 = vector.broadcast %cst_15 : f32 to vector<16x1xf32>
      %27 = arith.select %25, %20, %26 : vector<16x1xi1>, vector<16x1xf32>
      %c0_16 = arith.constant 0 : index
      %c0_17 = arith.constant 0 : index
      %c0_18 = arith.constant 0 : index
      %28 = vector.load %arg5[%c0_16, %c0_17, %c0_18] : memref<1x16x1xf32, #tpu.memory_space<vmem>>, vector<1x16x1xf32>
      %29 = vector.shape_cast %28 : vector<1x16x1xf32> to vector<16x1xf32>
      %30 = vector.shape_cast %27 : vector<16x1xf32> to vector<1x16x1xf32>
      tpu.vector_store %arg5[%c0_16, %c0_17, %c0_18], %30 {strides = array<i32>} : memref<1x16x1xf32, #tpu.memory_space<vmem>>, vector<1x16x1xf32>,
    } else {
    }
    return
  }
  func.func @transform_0(%arg0: i32, %arg1: i32, %arg2: i32) -> (i32, i32, i32) {
    %c0_i32 = arith.constant 0 : i32
    %c0_i32_0 = arith.constant 0 : i32
    return %arg0, %arg1, %c0_i32 : i32, i32, i32
  }
  func.func @transform_1(%arg0: i32, %arg1: i32, %arg2: i32) -> (i32, i32, i32) {
    %c1_i32 = arith.constant 1 : i32
    %0 = arith.subi %c1_i32, %arg0 : i32
    %c0_i32 = arith.constant 0 : i32
    %c0_i32_0 = arith.constant 0 : i32
    return %0, %arg2, %c0_i32 : i32, i32, i32
  }
  func.func @transform_2(%arg0: i32, %arg1: i32, %arg2: i32) -> (i32, i32, i32) {
    %c0_i32 = arith.constant 0 : i32
    %c0_i32_0 = arith.constant 0 : i32
    return %arg0, %arg1, %c0_i32 : i32, i32, i32
  }
}

</mosaic_0001>

<bundles_post_ra>
// kernel: tpu_custom_call.1
= control target key start
LH: loop header
LB: loop body
LE: loop exit
PB: predicated region body
PF: predicated region fallthrough
CT: control target
= control target key end

     0   :  { %7 = vsyncpa [#allocation6], 0  ;;  %s1131_s0 = inlined_call_operand.hbm [shape: bf16[2,16,128], index: 0, kind: input, shape index: {}]   ;;  %s1132_s1 = inlined_call_operand.hbm [shape: bf16[2,16,128], index: 1, kind: input, shape index: {}]   ;;  %s1133_s2 = inlined_call_operand.vmem [shape: f32[2,16,1], index: 2, kind: output, shape index: {}]  }
   0x1   :  { %9 = vsyncpa [#allocation6 + $0x1], 0 }
   0x2   :  { %10 = vsyncpa [#allocation8], 0 }
   0x3   :  { %12 = vsyncpa [#allocation8 + $0x1], 0  ;;  %s876_s9 = smov 0   ;;  %s878_s10 = smov 0  }
   0x4   :  { %s880_s11 = smov 0   ;;  %s882_s12 = smov 0  }
   0x5   :  { %s884_s13 = smov 0   ;;  %s886_s14 = smov 0  }
   0x6   :  { %s888_s15 = smov 0   ;;  %s890_s16 = smov 0  }
   0x7   :  { %s892_s17 = smov 0  }
   0x8 LB: > { %s577_s18 = sadd.s32 4294967295, %s851_s17   ;;  %s46_s19 = sadd.s32 1, %s839_s14  ;;  %s851_s17 = sphi %s892_s17, %s18_s17   ;;  %s847_s16 = sphi %s890_s16, %s1158_s16   ;;  %s843_s15 = sphi %s888_s15, %s1157_s15   ;;  %s839_s14 = sphi %s886_s14, %s1156_s14   ;;  %s835_s13 = sphi %s884_s13, %s1155_s13   ;;  %s831_s12 = sphi %s882_s12, %s1154_s12   ;;  %s827_s11 = sphi %s880_s11, %s1153_s11   ;;  %s823_s10 = sphi %s878_s10, %s1152_s10   ;;  %s819_s9 = sphi %s876_s9, %s1151_s9  }
   0x9   : > { %p53_p0 = scmp.ne.s32.totalorder %s839_s14, %s835_s13  ;;  %p1135_p1 = scmp.eq.s32.totalorder %s851_s17, 0 }
   0xa   : > { %p59_p2 = scmp.ne.s32.totalorder %s835_s13, %s831_s12  ;;  %p925_p3 = scmp.eq.s32.totalorder %s577_s18, 0 }
   0xb   : > { %p55_p4 = por %p1135_p1, %p53_p0  ;;  %p1134_p6 = scmp.lt.s32.totalorder %s851_s17, 2 }
   0xc   : > { %p933_p5 = por %p925_p3, %p59_p2  ;;  %s141_s22 = sand.u32 1, %s839_s14  }
   0xd   : > { %s595_s23 = sshll.u32 %s847_s16, 7  ;;  %s581_s24 = sshll.u32 %s141_s22, 3 }
   0xe   : > { %s1140_s21 = scalar_select %p933_p5, 1, 0 }
   0xf   : > { %s943_s27 = scalar_lea.hbm %s1131_s0, %s595_s23  ;;  %s145_s28 = scalar_lea.vmem [#allocation5], %s581_s24 }
  0x10   : > { %s154_s29 = sshll.u32 %s145_s28, 4  ;;  %p947_p7 = pnand %p1134_p6, %p55_p4  ;;  %s951_s29 = int_to_ptr.vmem [resolvable:$true] %s154_s29 }
  0x11   : > { %s953_s3 = scalar_lea.sflag [#allocation6], %s141_s22  ;;  %s713_s4 = scalar_lea.hbm %s943_s27, 128 }
  0x12   : > { %p714_p8 = scmp.ne.s32.totalorder %s943_s27, %s713_s4  ;;  %p715_p9 = pneg %p947_p7 }
  0x13   : > { %s718_s7 = scalar_lea.hbm %s1131_s0, 256  ;;  %p719_p12 = scmp.lt.u32.totalorder %s943_s27, %s1131_s0 }
  0x14   : > { %p716_p10 = pnand %p715_p9, %p714_p8  ;;  %p720_p13 = scmp.lt.u32.totalorder %s718_s7, %s713_s4 }
  0x15   : > { %p722_p2 = scmp.lt.u32.totalorder %s713_s4, %s943_s27 }
  0x16   : > { %p717_p11 = pneg %p716_p10  ;;  %p721_p0 = por %p720_p13, %p719_p12 }
  0x18   : > { %p723_p4 = por %p722_p2, %p721_p0 }
  0x1a   : > { %p724_p6 = pnand %p723_p4, %p717_p11 }
  0x1c   : > { %727 = shalt.err (!%p724_p6)
}
  0x1d   : > { %s728_s18 = scalar_lea.vmem %s951_s29, 128  ;;  %s853_s22 = smov [#allocation5]  }
  0x1e   : > { %p729_p8 = scmp.ne.s32.totalorder %s951_s29, %s728_s18  ;;  %s733_s23 = sshll.u32 %s853_s22, 4  ;;  %s734_s23 = int_to_ptr.vmem [resolvable:$false] %s733_s23 }
  0x1f   : > { %s735_s24 = scalar_lea.vmem %s734_s23, 256  ;;  %p736_p5 = scmp.lt.s32.totalorder %s951_s29, %s734_s23 }
  0x20   : > { %p731_p10 = pnand %p729_p8, %p715_p9  ;;  %p737_p12 = scmp.lt.s32.totalorder %s735_s24, %s728_s18 }
  0x22   : > { %p732_p1 = pneg %p731_p10  ;;  %p738_p13 = por %p737_p12, %p736_p5 }
  0x24   : > { %p739_p0 = pnand %p738_p13, %p732_p1 }
  0x26   : > { %742 = shalt.err (!%p739_p0)
}
  0x27   : > { %s1137_s25 = smov 64   ;;  %s855_s26 = smov 4  }
  0x28   : > { %617 = dma.hbm_to_vmem [thread:$0]  (!%p947_p7), %s943_s27, 128, %s951_s29, %s953_s3, %s1137_s25, %s1137_s25, %s855_s26  }
  0x29   : > { %p587_p1 = scmp.ge.s32.totalorder %s851_s17, 1  ;;  %p186_p5 = scmp.lt.s32.totalorder %s851_s17, 3 }
  0x2a   : > { %s37_s4 = sadd.s32 1, %s847_s16  ;;  %s69_s5 = ssub.s32 1, %s847_s16 }
  0x2b   : > { %p986_p6 = pnand %p587_p1, %p186_p5  ;;  %p39_p9 = scmp.ge.s32.totalorder %s37_s4, 2 }
  0x2c   : > { %s76_s6 = sadd.s32 1, %s827_s11  ;;  %p83_p11 = scmp.ne.s32.totalorder %s827_s11, %s823_s10 }
  0x2d   : > { %s1160_s4 = smov (%p39_p9, %s37_s4), 0  ;;  %p1143_p2 = scmp.eq.s32.totalorder %s851_s17, 0 }
  0x2e   : > { %p89_p4 = scmp.ne.s32.totalorder %s823_s10, %s819_s9  ;;  %s41_s29 = ssub.s32 %s847_s16, %s1160_s4 }
  0x2f   : > { %p999_p7 = por %p83_p11, %p1143_p2  ;;  %s70_s30 = ssub.s32 1, %s1160_s4 }
  0x30   : > { %p44_p8 = scmp.eq.s32.totalorder %s41_s29, 0  ;;  %s71_s3 = ssub.s32 %s69_s5, %s70_s30 }
  0x31   : > { %p74_p10 = scmp.eq.s32.totalorder %s71_s3, 0  ;;  %p1010_p12 = por %p89_p4, %p925_p3 }
  0x32   : > { %s1017_s8 = scalar_select %p44_p8, %s839_s14, %s46_s19  }
  0x33   : > { %s1145_s7 = scalar_select %p1010_p12, 1, 0 }
  0x34   : > { %s1020_s12 = scalar_select %p74_p10, %s827_s11, %s76_s6  }
  0x35   : > { %s164_s18 = sand.u32 1, %s827_s11   ;;  %s596_s22 = sshll.u32 %s69_s5, 7 }
  0x36   : > { %s584_s23 = sshll.u32 %s164_s18, 3  ;;  %s1026_s25 = scalar_lea.hbm %s1132_s1, %s596_s22 }
  0x37   : > { %s168_s20 = scalar_lea.vmem [#allocation7], %s584_s23  ;;  %p1146_p3 = scmp.lt.s32.totalorder %s851_s17, 2 }
  0x38   : > { %s178_s29 = sshll.u32 %s168_s20, 4  ;;  %s1038_s5 = scalar_lea.sflag [#allocation8], %s164_s18  ;;  %s1036_s29 = int_to_ptr.vmem [resolvable:$true] %s178_s29 }
  0x39   : > { %p1032_p13 = pnand %p1146_p3, %p999_p7  ;;  %s743_s6 = scalar_lea.hbm %s1026_s25, 128 }
  0x3a   : > { %p744_p0 = scmp.ne.s32.totalorder %s1026_s25, %s743_s6  ;;  %s748_s3 = scalar_lea.hbm %s1132_s1, 256 }
  0x3b   : > { %p745_p1 = pneg %p1032_p13  ;;  %p749_p11 = scmp.lt.u32.totalorder %s1026_s25, %s1132_s1 }
  0x3c   : > { %p750_p2 = scmp.lt.u32.totalorder %s748_s3, %s743_s6  ;;  %p752_p4 = scmp.lt.u32.totalorder %s743_s6, %s1026_s25 }
  0x3d   : > { %p746_p5 = pnand %p745_p1, %p744_p0 }
  0x3e   : > { %p751_p7 = por %p750_p2, %p749_p11 }
  0x3f   : > { %p747_p9 = pneg %p746_p5 }
  0x40   : > { %p753_p8 = por %p752_p4, %p751_p7 }
  0x42   : > { %p754_p10 = pnand %p753_p8, %p747_p9 }
  0x44   : > { %757 = shalt.err (!%p754_p10)
}
  0x45   : > { %s758_s18 = scalar_lea.vmem %s1036_s29, 128  ;;  %s856_s24 = smov [#allocation7]  }
  0x46   : > { %p759_p3 = scmp.ne.s32.totalorder %s1036_s29, %s758_s18  ;;  %s763_s9 = sshll.u32 %s856_s24, 4  ;;  %s764_s9 = int_to_ptr.vmem [resolvable:$false] %s763_s9 }
  0x47   : > { %s765_s20 = scalar_lea.vmem %s764_s9, 256  ;;  %p766_p12 = scmp.lt.s32.totalorder %s1036_s29, %s764_s9 }
  0x48   : > { %p761_p0 = pnand %p759_p3, %p745_p1  ;;  %p767_p11 = scmp.lt.s32.totalorder %s765_s20, %s758_s18 }
  0x4a   : > { %p762_p5 = pneg %p761_p0  ;;  %p768_p2 = por %p767_p11, %p766_p12 }
  0x4c   : > { %p769_p7 = pnand %p768_p2, %p762_p5 }
  0x4e   : > { %772 = shalt.err (!%p769_p7)
}
  0x4f   : > { %s1148_s6 = smov 64   ;;  %190 = sbr.rel (%p986_p6) target bundleno = 770 (0x302), region = 28 }
  0x50   : > { %620 = dma.hbm_to_vmem [thread:$0]  (!%p1032_p13), %s1026_s25, 128, %s1036_s29, %s1038_s5, %s1148_s6, %s1148_s6, %s855_s26  }
  0x51   : > { %s192_s27 = sand.u32 (!%p986_p6), 1, %s835_s13   ;;  %p1149_p12 = scmp.ne.s32.totalorder (!%p986_p6), %s1140_s21, 0 }
  0x52   : > { %s588_s30 = sshll.u32 (!%p986_p6), %s192_s27, 3  ;;  %s193_s3 = scalar_lea.sflag (!%p986_p6), [#allocation6], %s192_s27 }
  0x53   : > { %s196_s22 = scalar_lea.vmem (!%p986_p6), [#allocation5], %s588_s30 }
  0x56   : > { %810 = dma.done.wait (%p1149_p12), %s193_s3, 128  }
  0x57   : > { %812 = vsyncadd (%p1149_p12), %s193_s3, 4294967168  ;;  %s201_s19 = sand.u32 1, %s823_s10   ;;  %p1150_p13 = scmp.ne.s32.totalorder %s1145_s7, 0 }
  0x58   : > { %s589_s23 = sshll.u32 %s201_s19, 3  ;;  %s202_s18 = scalar_lea.sflag [#allocation8], %s201_s19 }
  0x59   : > { %s205_s25 = scalar_lea.vmem [#allocation7], %s589_s23 }
  0x5a   : > { %814 = dma.done.wait (%p1150_p13), %s202_s18, 128  }
  0x5b   : > { %816 = vsyncadd (%p1150_p13), %s202_s18, 4294967168  ;;  %p239_p6 = scmp.lt.s32.totalorder %s843_s15, 1  ;;  %vm262_vm0 = vcmask 7168   ;;  %v857_v0 = vmov 0.0   ;;  %vm858_vm1 = vmmov 0   ;;  %v702_v1 = vld [vmem:[%s205_s25] sm:$0xff]   ;;  %v374_v9 = vlaneseq }
  0x5c   : > { %265 = vst.msk [vmem:[#allocation4] sm:$0xff] %vm262_vm0, %v857_v0  ;;  %266 = vst.msk [vmem:[#allocation4 + $0x8] sm:$0xff] %vm262_vm0, %v857_v0  ;;  %604 = vmatprep.subr.bf16.mxu0 %v857_v0  ;;  %606 = vmatprep.mubr.msk.bf16.mxu0 %vm858_vm1, %v857_v0  ;;  %v599_v2 = vld [vmem:[%s196_s22] sm:$0xff]   ;;  %v859_v8 = vmov -inf   ;;  %vm383_vm3 = vcmask 130048   ;;  %v860_v19 = vmov 0  }
  0x5d   : > { %s1162_s15 = smov (!%p239_p6, %s843_s15), 1  ;;  %605 = vmatpush3.bf16.xpose.msra.mxu0 %v702_v1  ;;  %v600_v3 = vunpack.c.l.bf16 %v599_v2  ;;  %v601_v4 = vunpack.c.h.bf16 %v599_v2  ;;  %263 = vst.msk [vmem:[#allocation3] sm:$0xff] %vm262_vm0, %v859_v8  ;;  %264 = vst.msk [vmem:[#allocation3 + $0x8] sm:$0xff] %vm262_vm0, %v859_v8  ;;  %v375_v10 = vand.u32 127, %v374_v9  ;;  %700 = vset.pattern.permute.xlu1 %v860_v19 }
  0x5e   : > { %s597_s21 = sshll.u32 %s1162_s15, 4  ;;  %701 = vset.pattern.permute.xlu0 %v860_v19 }
  0x5f   : > { %s1088_s29 = scalar_lea.vmem %s1133_s2, %s597_s21  ;;  %v258_v5 = vmul.f32 2.0, %v600_v3  ;;  %v259_v6 = vmul.f32 2.0, %v601_v4  ;;  %vm376_vm2 = vcmp.lt.s32.totalorder %v375_v10, 8 }
  0x60   : > { %452 = vst.msk [vmem:[%s1088_s29 + $0x8] sm:$0xff] %vm262_vm0, %v857_v0 }
  0x61   : > { %v260_v7 = vpack.c.bf16 %v259_v6, %v258_v5 }
  0x63   : > { %v392_v41 = vld [vmem:[#allocation4] sm:$0xff]  ;;  %v393_v45 = vld [vmem:[#allocation4 + $0x8] sm:$0xff] }
  0x64   : > { %607 = vmatmul.mubr.bf16.vlgmr.msra.gmra.mrb[0].mxu0 %v260_v7  ;;  %v381_v20 = vld [vmem:[#allocation3] sm:$0xff]  ;;  %v382_v23 = vld [vmem:[#allocation3 + $0x8] sm:$0xff] }
 0x137   : > { %v310_v11 = vpop.f32.mrb[0].mxu0 }
 0x138   : > { %v379_v12 = vsel %vm376_vm2, %v310_v11, -inf  ;;  %v608_v13 = vpop.f32.mrb[1].mxu0 }
 0x139   : > { %v313_v14 = vpop.f32.mrb[2].mxu0  ;;  %v384_v15 = vsel %vm383_vm3, %v379_v12, -inf }
 0x13a   : > { %v380_v16 = vsel %vm376_vm2, %v313_v14, -inf  ;;  %385 = vmax.xlane.f32.xlu0 %v384_v15  ;;  %v609_v17 = vpop.f32.mrb[3].mxu0 }
 0x13b   : > { %v387_v18 = vsel %vm383_vm3, %v380_v16, -inf }
 0x13e   : > { %388 = vmax.xlane.f32.xlu0 %v387_v18 }
 0x1c7   : > { %v386_v21 = vpop.xlane.xlu0 %385 }
 0x1c8   : > { %v390_v22 = vmax.f32 %v381_v20, %v386_v21 }
 0x1ca   : > { %v394_v24 = vsub.f32 %v381_v20, %v390_v22  ;;  %429 = vst.msk [vmem:[#allocation3] sm:$0xff] %vm262_vm0, %v390_v22  ;;  %404 = vperm.xlu1 %700, %v390_v22  }
 0x1cb   : > { %v389_v25 = vpop.xlane.xlu0 %388 }
 0x1cc   : > { %v391_v26 = vmax.f32 %v382_v23, %v389_v25  ;;  %v396_v38 = vmul.f32 1.442695, %v394_v24 }
 0x1ce   : > { %v395_v27 = vsub.f32 %v382_v23, %v391_v26  ;;  %430 = vst.msk [vmem:[#allocation3 + $0x8] sm:$0xff] %vm262_vm0, %v391_v26  ;;  %409 = vperm.xlu1 %700, %v391_v26  }
 0x1d0   : > { %v398_v39 = vmul.f32 1.442695, %v395_v27 }
 0x1d1   : > { %v431_v53 = vld [vmem:[#allocation3] sm:$0xff] }
 0x249   : > { %v405_v28 = vpop.permute.xlu1 %404 }
 0x24a   : > { %v412_v29 = vsub.f32 %v379_v12, %v405_v28 }
 0x24c   : > { %v414_v30 = vmul.f32 1.442695, %v412_v29 }
 0x24d   : > { %v410_v31 = vpop.permute.xlu1 %409 }
 0x24e   : > { %703 = vpow2.f32 %v414_v30  ;;  %v413_v32 = vsub.f32 %v380_v16, %v410_v31 }
 0x250   : > { %v416_v33 = vmul.f32 1.442695, %v413_v32 }
 0x252   : > { %705 = vpow2.f32 %v416_v33 }
 0x253   : > { %707 = vpow2.f32 %v396_v38 }
 0x254   : > { %709 = vpow2.f32 %v398_v39 }
 0x258   : > { %v704_v34 = vpop.eup %703 }
 0x259   : > { %v418_v35 = vsel %vm383_vm3, %v704_v34, 0.0 }
 0x25a   : > { %419 = vadd.xlane.f32.xlu0 %v418_v35 }
 0x25c   : > { %v706_v36 = vpop.eup %705 }
 0x25d   : > { %v421_v37 = vsel %vm383_vm3, %v706_v36, 0.0  ;;  %v708_v40 = vpop.eup %707 }
 0x25e   : > { %422 = vadd.xlane.f32.xlu1 %v421_v37  ;;  %v400_v42 = vmul.f32 %v708_v40, %v392_v41  ;;  %v710_v43 = vpop.eup %709 }
 0x25f   : > { %v401_v47 = vmul.f32 %v710_v43, %v393_v45 }
 0x2e7   : > { %v420_v44 = vpop.xlane.xlu0 %419 }
 0x2e8   : > { %v424_v46 = vadd.f32 %v420_v44, %v400_v42 }
 0x2ea   : > { %427 = vst.msk [vmem:[#allocation4] sm:$0xff] %vm262_vm0, %v424_v46 }
 0x2eb   : > { %v423_v48 = vpop.xlane.xlu1 %422 }
 0x2ec   : > { %v425_v49 = vadd.f32 %v423_v48, %v401_v47 }
 0x2ee   : > { %428 = vst.msk [vmem:[#allocation4 + $0x8] sm:$0xff] %vm262_vm0, %v425_v49 }
 0x2f1   : > { %v433_v50 = vld [vmem:[#allocation4] sm:$0xff] }
 0x2f2   : > { %711 = vlog2.f32 %v433_v50 }
 0x2fc   : > { %v712_v51 = vpop.eup %711 }
 0x2fd   : > { %v436_v52 = vmul.f32 0.6931472, %v712_v51 }
 0x2ff   : > { %v439_v54 = vadd.f32 %v436_v52, %v431_v53 }
 0x301   : > { %451 = vst.msk [vmem:[%s1088_s29] sm:$0xff] %vm262_vm0, %v439_v54 }
 0x302 PF: > { %s18_s17 = sadd.s32 1, %s851_s17   ;;  %s1151_s9 = smov %s823_s10 }
 0x303   : > { %p15_p1 = scmp.ge.s32.totalorder %s18_s17, 4   ;;  %s1152_s10 = smov %s827_s11 }
 0x304   : > { %s1153_s11 = smov %s1020_s12  ;;  %s1154_s12 = smov %s835_s13 }
 0x305   : > { %s1155_s13 = smov %s839_s14  ;;  %s1156_s14 = smov %s1017_s8 }
 0x306   : > { %s1157_s15 = smov %s847_s16  ;;  %s1158_s16 = smov %s1160_s4 }
 0x307   :  { %17 = sbr.rel (!%p15_p1) target bundleno = 8 (0x8), region = 93 }
 0x30e   :  { %483 = vsyncpa [#allocation6], 1 }
 0x30f   :  { %485 = vsyncpa [#allocation6 + $0x1], 1 }
 0x310   :  { %486 = vsyncpa [#allocation8], 1 }
 0x311   :  { %488 = vsyncpa [#allocation8 + $0x1], 1 }

</bundles_post_ra>
